<compile_context>
chip_gen: v5e
topology: v5e:2x2
jax: 0.10.0
libtpu: 0.0.40
codegen_flags: <defaults>
</compile_context>

<pallas_src>
import numpy as np
import jax
import jax.numpy as jnp
from jax.experimental import pallas as pl
from jax.experimental.pallas import tpu as pltpu

# ----------------------------- sizes / config -------------------------------
NPAD = 128                 # padded node count (>= total merged nodes), lane axis
NFEAT, NHID, NOUT = 16, 32, 16
N_STEPS = 3
STEP_THRESHOLD = 0.8
NC = 2 * NHID + 8          # packed per-step constants column: [b1 | W2@wi | c | pad]


# ------------------------------ Pallas kernel -------------------------------
def mgsnn_search_kernel(xT_ref, adj_ref, masks_ref, w1T_ref, fc_ref,
                        imp_ref, nbr_ref):
    """Full GSNN search on the zero-padded merged graph (node index on the LANE axis).

    Inputs (all VMEM, single invocation, no grid):
      xT_ref    (NFEAT, NPAD) bf16            merged features^T, zero-padded columns
      adj_ref   (NPAD, NPAD)  bf16            merged adjacency (symmetric, 0/1, padded)
      masks_ref (8, NPAD)     f32             row0 init active, row1 expansion filter
                                              (KG & object), row2 final filter
                                              (KG & ~object), row3 keep mask for the
                                              final 'multiple'/'single' zeroing
      w1T_ref   (N_STEPS, NHID, NFEAT) bf16   per-step W1^T
      fc_ref    (N_STEPS, NC, 1)       f32    per-step [b1 | W2@wi | b2@wi+bi | pad]
    Outputs:
      imp_ref   (1, NPAD) f32   final-step importances (valid on final-neighbour lanes)
      nbr_ref   (1, NPAD) f32   final-step neighbour selection mask (0/1)
    """
    f32 = jnp.float32
    bf16 = jnp.bfloat16

    adj = adj_ref[...]                           # (NPAD, NPAD) bf16
    xT = xT_ref[...]                             # (NFEAT, NPAD) bf16
    masks = masks_ref[...]                       # (8, NPAD) f32
    active = masks[0:1, :]                       # (1, NPAD) 0/1 f32
    filt_exp = masks[1:2, :]
    filt_fin = masks[2:3, :]
    keep_fin = masks[3:4, :]

    lane_f = jax.lax.broadcasted_iota(jnp.int32, (1, NPAD), 1).astype(f32)
    neg1 = jnp.float32(-1.0)                     # sigmoid > 0, safe reduction filler
    done = jnp.zeros((1, 1), f32)                # 0 = still expanding, 1 = early-stopped

    def colsum_over(rows):
        """(1, NPAD)_j = sum_i rows_i * A[i, j]  via one (8,NPAD)x(NPAD,NPAD) MXU pass."""
        m8 = jnp.broadcast_to(rows, (8, NPAD)).astype(bf16)
        r8 = jnp.dot(m8, adj, preferred_element_type=f32)
        return r8[0:1, :]

    def importance(sel, s):
        """Fused 2-layer GCN + linear importance head on the node subset `sel`.

        Subgraph restriction is done by lane-masking the aggregated operand with
        `sel` before each aggregation matmul; the adjacency itself stays untouched
        bf16 (symmetric, so A serves as A^T in the transposed orientation).
        Values are valid at selected lanes; other lanes are never read.
        """
        w1T = w1T_ref[s]                         # (NHID, NFEAT) bf16, static step index
        fc = fc_ref[s]                           # (NC, 1) f32
        b1c = fc[0:NHID, :]                      # (NHID, 1)
        w2c = fc[NHID:2 * NHID, :]               # (NHID, 1) = W2 @ wi
        c = fc[2 * NHID:2 * NHID + 1, :]         # (1, 1)    = b2 @ wi + bi

        xw = jnp.dot(w1T, xT, preferred_element_type=f32)          # (NHID, NPAD)
        xw = xw * sel                                               # restrict messages
        hT = jnp.dot(xw.astype(bf16), adj, preferred_element_type=f32) + b1c
        hT = jnp.maximum(hT, 0.0)                                   # relu (dropout = id)
        tT = jnp.sum(hT * w2c, axis=0, keepdims=True)               # (1, NPAD) = (h@W2wi)^T
        tT = tT * sel                                               # restrict messages
        s8 = jnp.dot(jnp.broadcast_to(tT, (8, NPAD)).astype(bf16), adj,
                     preferred_element_type=f32)
        return jax.nn.sigmoid(s8[0:1, :] + c)                       # (1, NPAD) f32

    # --------------- expansion steps (static unroll, early-stop flag) ---------------
    for s in range(N_STEPS - 1):
        colsum = colsum_over(active)
        nbr = jnp.where((colsum > 0.0) & (active < 0.5), filt_exp, 0.0)
        imp = importance(active + nbr, s)

        nn = jnp.sum(nbr, axis=1, keepdims=True)
        max_act = jnp.max(jnp.where(active > 0.5, imp, neg1), axis=1, keepdims=True)
        imp_nbr = jnp.where(nbr > 0.5, imp, neg1)
        max_nbr = jnp.max(imp_nbr, axis=1, keepdims=True)
        # top-1 neighbour = lowest node id among lanes hitting the max
        cand = jnp.where((imp_nbr >= max_nbr) & (nbr > 0.5), lane_f, jnp.float32(NPAD))
        arg = jnp.min(cand, axis=1, keepdims=True)
        onehot = jnp.where(lane_f == arg, nbr, 0.0)

        stop = (nn < 0.5) | (STEP_THRESHOLD * max_act > max_nbr)
        stop_f = jnp.where(stop, 1.0, 0.0)                          # (1,1) f32
        append_f = (1.0 - done) * (1.0 - stop_f)
        active = active + append_f * onehot
        done = jnp.maximum(done, stop_f)

    # --------------- final step: non-object KG neighbours ---------------------------
    colsum = colsum_over(active)
    nbr_fin = jnp.where((colsum > 0.0) & (active < 0.5), filt_fin, 0.0)
    imp = importance(active + nbr_fin, N_STEPS - 1)
    imp_ref[...] = imp * keep_fin               # 'multiple'/'single' zeroing folded in
    nbr_ref[...] = nbr_fin


_VMEM = pl.BlockSpec(memory_space=pltpu.MemorySpace.VMEM)
mgsnn_device = jax.jit(pl.pallas_call(
    mgsnn_search_kernel,
    out_shape=(jax.ShapeDtypeStruct((1, NPAD), jnp.float32),
               jax.ShapeDtypeStruct((1, NPAD), jnp.float32)),
    in_specs=[_VMEM, _VMEM, _VMEM, _VMEM, _VMEM],
    out_specs=(_VMEM, _VMEM),
))


# ------------------------------- graph glue ---------------------------------
def merge_graphs(x, KG_adj, SG_adj):
    """Append the scene-graph nodes to the KG.  SG node i is grounded to KG node i
    (synthetic mapping) and gets that node's embedding.  Result is symmetric."""
    n_kg = KG_adj.shape[0]
    n_sg = SG_adj.shape[0]
    sg_to_kg = np.arange(n_sg)
    x_np = np.asarray(x)
    x_m = np.concatenate([x_np, x_np[sg_to_kg]], axis=0)

    adj = np.zeros((n_kg + n_sg, n_kg + n_sg), np.float32)
    adj[:n_kg, :n_kg] = np.asarray(KG_adj)
    adj[n_kg:, n_kg:] = np.asarray(SG_adj)
    for i, k in enumerate(sg_to_kg):
        adj[n_kg + i, k] = 1.0
        adj[k, n_kg + i] = 1.0
    return x_m, adj


# ------------------------------ MGSNN forward -------------------------------
def mgsnn_forward(x, KG_adj, SG_adj, active_idx_init, packed_params,
                  KG_vocab, KG_nodes):
    """Single-dispatch GSNN forward: all per-step search logic runs on device."""
    x_m, adj_m = merge_graphs(x, KG_adj, SG_adj)
    n_kg = KG_adj.shape[0]
    n_tot = adj_m.shape[0]
    assert n_tot <= NPAD
    # The kernel uses the same (symmetric) adjacency for message aggregation (as A^T)
    # and for neighbour expansion (as A).
    assert np.allclose(adj_m, adj_m.T)

    # Device-resident padded operands, built & uploaded once.
    xT_pad = np.zeros((NFEAT, NPAD), np.float32)
    xT_pad[:, :n_tot] = x_m.T
    adj_pad = np.zeros((NPAD, NPAD), np.float32)
    adj_pad[:n_tot, :n_tot] = adj_m

    # TODO(synk): the vocabulary string filtering ('objects' membership,
    # 'multiple'/'single' substring checks vs. the SG diagonal) has no device
    # representation; it is precomputed ONCE here into boolean lane masks.
    obj_set = KG_nodes["objects"][0]
    is_obj = np.zeros(NPAD, bool)
    for i in range(n_kg):
        is_obj[i] = KG_vocab[i] in obj_set
    is_kg = np.arange(NPAD) < n_kg

    init_active = np.zeros(NPAD, np.float32)
    init_active[np.asarray(active_idx_init[0])] = 1.0

    sg_diag = np.diag(np.asarray(SG_adj))
    any_not1 = bool(np.any(sg_diag != 1))
    any_is1 = bool(np.any(sg_diag == 1))
    keep = np.ones(NPAD, np.float32)
    for i in range(n_kg):
        if "multiple" in KG_vocab[i] and any_not1:
            keep[i] = 0.0
        elif "single" in KG_vocab[i] and any_is1:
            keep[i] = 0.0

    masks = np.zeros((8, NPAD), np.float32)
    masks[0] = init_active
    masks[1] = (is_kg & is_obj).astype(np.float32)      # expansion-step neighbour filter
    masks[2] = (is_kg & ~is_obj).astype(np.float32)     # final-step neighbour filter
    masks[3] = keep                                      # final zeroing (keep) mask

    w1T_all, fc_all = packed_params

    imp_row, nbr_row = mgsnn_device(
        jnp.asarray(xT_pad, jnp.bfloat16),
        jnp.asarray(adj_pad, jnp.bfloat16),
        jnp.asarray(masks, jnp.float32),
        w1T_all, fc_all)

    imp_np = np.asarray(jax.block_until_ready(imp_row))[0]    # single ~1 KB D2H
    nbr_np = np.asarray(nbr_row)[0]
    ids = np.nonzero(nbr_np > 0.5)[0].astype(np.int32)        # sorted node-id order,
    return jnp.asarray(imp_np[ids]), jnp.asarray(ids)         # as in torch nonzero


# -------------------------------- params ------------------------------------
def make_params(key):
    """Deterministic per-step GCN + Importance_net weights."""
    params = []
    for s in range(N_STEPS):
        ks = jax.random.split(jax.random.fold_in(key, s), 6)
        w1 = 0.1 * jax.random.normal(ks[0], (NFEAT, NHID), jnp.float32)
        b1 = 0.1 * jax.random.normal(ks[1], (1, NHID), jnp.float32)
        w2 = 0.1 * jax.random.normal(ks[2], (NHID, NOUT), jnp.float32)
        b2 = 0.1 * jax.random.normal(ks[3], (1, NOUT), jnp.float32)
        wi = 0.1 * jax.random.normal(ks[4], (NOUT, 1), jnp.float32)
        bi = 0.1 * jax.random.normal(ks[5], (1, 1), jnp.float32)
        params.append((w1, b1, w2, b2, wi, bi))
    return params


def pack_params(raw_params):
    """Fold the GCN output layer + importance head and stack per-step operands.

      w1T_all (N_STEPS, NHID, NFEAT) bf16 : per-step W1^T
      fc_all  (N_STEPS, NC, 1)       f32  : rows [0:NHID]=b1, [NHID:2*NHID]=W2@wi,
                                            [2*NHID]=b2@wi+bi  (Kipf-style fold)
    """
    w1Ts, fcs = [], []
    for (w1, b1, w2, b2, wi, bi) in raw_params:
        w1_np, b1_np = np.asarray(w1), np.asarray(b1)
        w2_np, b2_np = np.asarray(w2), np.asarray(b2)
        wi_np, bi_np = np.asarray(wi), np.asarray(bi)
        w2i = w2_np @ wi_np                                   # (NHID, 1)
        c = float((b2_np @ wi_np)[0, 0] + bi_np[0, 0])        # scalar
        fc = np.zeros((NC, 1), np.float32)
        fc[0:NHID, 0] = b1_np.reshape(-1)
        fc[NHID:2 * NHID, 0] = w2i[:, 0]
        fc[2 * NHID, 0] = c
        w1Ts.append(w1_np.T.astype(np.float32))
        fcs.append(fc)
    return (jnp.asarray(np.stack(w1Ts), jnp.bfloat16),
            jnp.asarray(np.stack(fcs), jnp.float32))


# -------------------------------- main ---------------------------------------
if __name__ == "__main__":
    key = jax.random.PRNGKey(0)
    k_x, k_kg, k_sg = jax.random.split(key, 3)

    N_KG, N_SG = 40, 8

    # synthetic KG vocabulary and object categories
    KG_vocab = ([f"obj_{i}" for i in range(30)]
                + [f"attr_single_{i}" for i in range(5)]
                + [f"attr_multiple_{i}" for i in range(5)])
    KG_nodes = {"objects": [set(f"obj_{i}" for i in range(30))]}

    # KG node embeddings
    x = jax.random.normal(k_x, (N_KG, NFEAT), jnp.float32)

    # symmetric random KG adjacency (with self loops)
    a = (jax.random.uniform(k_kg, (N_KG, N_KG)) < 0.15).astype(jnp.float32)
    KG_adj = jnp.clip(a + a.T + jnp.eye(N_KG), 0.0, 1.0)

    # scene-graph adjacency with a mixed diagonal
    s = (jax.random.uniform(k_sg, (N_SG, N_SG)) < 0.3).astype(jnp.float32)
    diag = jnp.array([1, 0, 1, 0, 1, 0, 0, 1], jnp.float32)
    SG_adj = jnp.clip(s + s.T, 0.0, 1.0) * (1 - jnp.eye(N_SG)) + jnp.diag(diag)

    # active nodes = the appended SG nodes in the merged graph
    active_idx_init = [jnp.arange(N_KG, N_KG + N_SG, dtype=jnp.int32)]

    packed_params = pack_params(make_params(jax.random.PRNGKey(0)))

    imp_out, idx_out = mgsnn_forward(x, KG_adj, SG_adj, active_idx_init,
                                     packed_params, KG_vocab, KG_nodes)
    jax.block_until_ready(imp_out)
    jax.block_until_ready(idx_out)

    imp_host = np.asarray(imp_out)
    idx_host = np.asarray(idx_out)
    assert imp_out.shape == idx_out.shape
    assert imp_out.dtype == jnp.float32
    assert np.all(np.isfinite(imp_host))
    assert np.all((imp_host >= 0.0) & (imp_host <= 1.0))
    assert np.all(idx_host < N_KG)           # final neighbours are KG (attribute) nodes
    print("KERNEL_OK")
</pallas_src>

<mosaic_0001>
module attributes {stable_mosaic.version = 11 : i64} {
  func.func @mgsnn_search_kernel(%arg0: memref<16x128xbf16, #tpu.memory_space<vmem>>, %arg1: memref<128x128xbf16, #tpu.memory_space<vmem>>, %arg2: memref<8x128xf32, #tpu.memory_space<vmem>>, %arg3: memref<3x32x16xbf16, #tpu.memory_space<vmem>>, %arg4: memref<3x72x1xf32, #tpu.memory_space<vmem>>, %arg5: memref<1x128xf32, #tpu.memory_space<vmem>>, %arg6: memref<1x128xf32, #tpu.memory_space<vmem>>) attributes {dimension_semantics = [], scalar_prefetch = 0 : i64, scratch_operands = 0 : i64, tpu.core_type = #tpu.core_type<tc>} {
    %c0 = arith.constant 0 : index
    %c0_0 = arith.constant 0 : index
    %0 = vector.load %arg1[%c0, %c0_0] : memref<128x128xbf16, #tpu.memory_space<vmem>>, vector<128x128xbf16>
    %c0_1 = arith.constant 0 : index
    %c0_2 = arith.constant 0 : index
    %1 = vector.load %arg0[%c0_1, %c0_2] : memref<16x128xbf16, #tpu.memory_space<vmem>>, vector<16x128xbf16>
    %c0_3 = arith.constant 0 : index
    %c0_4 = arith.constant 0 : index
    %2 = vector.load %arg2[%c0_3, %c0_4] : memref<8x128xf32, #tpu.memory_space<vmem>>, vector<8x128xf32>
    %3 = vector.extract_strided_slice %2 {offsets = [0, 0], sizes = [1, 128], strides = [1, 1]} : vector<8x128xf32> to vector<1x128xf32>
    %4 = vector.extract_strided_slice %2 {offsets = [1, 0], sizes = [1, 128], strides = [1, 1]} : vector<8x128xf32> to vector<1x128xf32>
    %5 = vector.extract_strided_slice %2 {offsets = [2, 0], sizes = [1, 128], strides = [1, 1]} : vector<8x128xf32> to vector<1x128xf32>
    %6 = vector.extract_strided_slice %2 {offsets = [3, 0], sizes = [1, 128], strides = [1, 1]} : vector<8x128xf32> to vector<1x128xf32>
    %7 = tpu.iota {dimensions = array<i32: 1>} : vector<1x128xi32>
    %8 = arith.sitofp %7 : vector<1x128xi32> to vector<1x128xf32>
    %cst = arith.constant 0.000000e+00 : f32
    %9 = vector.broadcast %cst : f32 to vector<1x1xf32>
    %10 = vector.shape_cast %3 : vector<1x128xf32> to vector<1x128xf32>
    %11 = vector.broadcast %10 : vector<1x128xf32> to vector<8x128xf32>
    %12 = arith.truncf %11 : vector<8x128xf32> to vector<8x128xbf16>
    %cst_5 = arith.constant dense<0.000000e+00> : vector<8x128xf32>
    %13 = tpu.matmul %12, %0, %cst_5 {dimension_numbers = #tpu.dot_dimension_numbers<[1], [0], [0], [1], [0, 0, 1, 1], [], []>} : vector<8x128xbf16>, vector<128x128xbf16>, vector<8x128xf32> -> vector<8x128xf32>
    %14 = vector.extract_strided_slice %13 {offsets = [0, 0], sizes = [1, 128], strides = [1, 1]} : vector<8x128xf32> to vector<1x128xf32>
    %cst_6 = arith.constant 0.000000e+00 : f32
    %15 = vector.broadcast %cst_6 : f32 to vector<1x128xf32>
    %16 = arith.cmpf ogt, %14, %15 : vector<1x128xf32>
    %cst_7 = arith.constant 5.000000e-01 : f32
    %17 = vector.broadcast %cst_7 : f32 to vector<1x128xf32>
    %18 = arith.cmpf olt, %3, %17 : vector<1x128xf32>
    %19 = arith.andi %16, %18 : vector<1x128xi1>
    %cst_8 = arith.constant 0.000000e+00 : f32
    %20 = vector.broadcast %cst_8 : f32 to vector<1x128xf32>
    %21 = arith.select %19, %4, %20 : vector<1x128xi1>, vector<1x128xf32>
    %22 = arith.addf %3, %21 : vector<1x128xf32>
    %c0_9 = arith.constant 0 : index
    %c0_10 = arith.constant 0 : index
    %c0_11 = arith.constant 0 : index
    %23 = vector.load %arg3[%c0_9, %c0_10, %c0_11] : memref<3x32x16xbf16, #tpu.memory_space<vmem>>, vector<1x32x16xbf16>
    %24 = vector.shape_cast %23 : vector<1x32x16xbf16> to vector<32x16xbf16>
    %c0_12 = arith.constant 0 : index
    %c0_13 = arith.constant 0 : index
    %c0_14 = arith.constant 0 : index
    %25 = vector.load %arg4[%c0_12, %c0_13, %c0_14] : memref<3x72x1xf32, #tpu.memory_space<vmem>>, vector<1x72x1xf32>
    %26 = vector.shape_cast %25 : vector<1x72x1xf32> to vector<72x1xf32>
    %27 = vector.extract_strided_slice %26 {offsets = [0, 0], sizes = [32, 1], strides = [1, 1]} : vector<72x1xf32> to vector<32x1xf32>
    %28 = vector.extract_strided_slice %26 {offsets = [32, 0], sizes = [32, 1], strides = [1, 1]} : vector<72x1xf32> to vector<32x1xf32>
    %29 = vector.extract_strided_slice %26 {offsets = [64, 0], sizes = [1, 1], strides = [1, 1]} : vector<72x1xf32> to vector<1x1xf32>
    %cst_15 = arith.constant dense<0.000000e+00> : vector<32x128xf32>
    %30 = tpu.matmul %24, %1, %cst_15 {dimension_numbers = #tpu.dot_dimension_numbers<[1], [0], [0], [1], [0, 0, 1, 1], [], []>} : vector<32x16xbf16>, vector<16x128xbf16>, vector<32x128xf32> -> vector<32x128xf32>
    %31 = vector.broadcast %22 : vector<1x128xf32> to vector<32x128xf32>
    %32 = arith.mulf %30, %31 : vector<32x128xf32>
    %33 = arith.truncf %32 : vector<32x128xf32> to vector<32x128xbf16>
    %cst_16 = arith.constant dense<0.000000e+00> : vector<32x128xf32>
    %34 = tpu.matmul %33, %0, %cst_16 {dimension_numbers = #tpu.dot_dimension_numbers<[1], [0], [0], [1], [0, 0, 1, 1], [], []>} : vector<32x128xbf16>, vector<128x128xbf16>, vector<32x128xf32> -> vector<32x128xf32>
    %35 = vector.broadcast %27 : vector<32x1xf32> to vector<32x128xf32>
    %36 = arith.addf %34, %35 : vector<32x128xf32>
    %cst_17 = arith.constant 0.000000e+00 : f32
    %37 = vector.broadcast %cst_17 : f32 to vector<32x128xf32>
    %38 = arith.maximumf %36, %37 : vector<32x128xf32>
    %39 = vector.broadcast %28 : vector<32x1xf32> to vector<32x128xf32>
    %40 = arith.mulf %38, %39 : vector<32x128xf32>
    %cst_18 = arith.constant dense<0.000000e+00> : vector<128xf32>
    %41 = vector.multi_reduction <add>, %40, %cst_18 [0] : vector<32x128xf32> to vector<128xf32>
    %42 = vector.shape_cast %41 : vector<128xf32> to vector<1x128xf32>
    %43 = arith.mulf %42, %22 : vector<1x128xf32>
    %44 = vector.shape_cast %43 : vector<1x128xf32> to vector<1x128xf32>
    %45 = vector.broadcast %44 : vector<1x128xf32> to vector<8x128xf32>
    %46 = arith.truncf %45 : vector<8x128xf32> to vector<8x128xbf16>
    %cst_19 = arith.constant dense<0.000000e+00> : vector<8x128xf32>
    %47 = tpu.matmul %46, %0, %cst_19 {dimension_numbers = #tpu.dot_dimension_numbers<[1], [0], [0], [1], [0, 0, 1, 1], [], []>} : vector<8x128xbf16>, vector<128x128xbf16>, vector<8x128xf32> -> vector<8x128xf32>
    %48 = vector.extract_strided_slice %47 {offsets = [0, 0], sizes = [1, 128], strides = [1, 1]} : vector<8x128xf32> to vector<1x128xf32>
    %49 = vector.broadcast %29 : vector<1x1xf32> to vector<1x128xf32>
    %50 = arith.addf %48, %49 : vector<1x128xf32>
    %51 = arith.negf %50 : vector<1x128xf32>
    %52 = math.exp %51 : vector<1x128xf32>
    %cst_20 = arith.constant 1.000000e+00 : f32
    %53 = vector.broadcast %cst_20 : f32 to vector<1x128xf32>
    %54 = arith.addf %53, %52 : vector<1x128xf32>
    %55 = arith.divf %53, %54 : vector<1x128xf32>
    %cst_21 = arith.constant dense<0.000000e+00> : vector<1xf32>
    %56 = vector.multi_reduction <add>, %21, %cst_21 [1] : vector<1x128xf32> to vector<1xf32>
    %57 = vector.shape_cast %56 : vector<1xf32> to vector<1x1xf32>
    %cst_22 = arith.constant 5.000000e-01 : f32
    %58 = vector.broadcast %cst_22 : f32 to vector<1x128xf32>
    %59 = arith.cmpf ogt, %3, %58 : vector<1x128xf32>
    %cst_23 = arith.constant -1.000000e+00 : f32
    %60 = vector.broadcast %cst_23 : f32 to vector<1x128xf32>
    %61 = arith.select %59, %55, %60 : vector<1x128xi1>, vector<1x128xf32>
    %cst_24 = arith.constant dense<0xFF800000> : vector<1xf32>
    %62 = vector.multi_reduction <maximumf>, %61, %cst_24 [1] : vector<1x128xf32> to vector<1xf32>
    %63 = vector.shape_cast %62 : vector<1xf32> to vector<1x1xf32>
    %cst_25 = arith.constant 5.000000e-01 : f32
    %64 = vector.broadcast %cst_25 : f32 to vector<1x128xf32>
    %65 = arith.cmpf ogt, %21, %64 : vector<1x128xf32>
    %cst_26 = arith.constant -1.000000e+00 : f32
    %66 = vector.broadcast %cst_26 : f32 to vector<1x128xf32>
    %67 = arith.select %65, %55, %66 : vector<1x128xi1>, vector<1x128xf32>
    %cst_27 = arith.constant dense<0xFF800000> : vector<1xf32>
    %68 = vector.multi_reduction <maximumf>, %67, %cst_27 [1] : vector<1x128xf32> to vector<1xf32>
    %69 = vector.shape_cast %68 : vector<1xf32> to vector<1x1xf32>
    %70 = vector.broadcast %69 : vector<1x1xf32> to vector<1x128xf32>
    %71 = arith.cmpf oge, %67, %70 : vector<1x128xf32>
    %cst_28 = arith.constant 5.000000e-01 : f32
    %72 = vector.broadcast %cst_28 : f32 to vector<1x128xf32>
    %73 = arith.cmpf ogt, %21, %72 : vector<1x128xf32>
    %74 = arith.andi %71, %73 : vector<1x128xi1>
    %cst_29 = arith.constant 1.280000e+02 : f32
    %75 = vector.broadcast %cst_29 : f32 to vector<1x128xf32>
    %76 = arith.select %74, %8, %75 : vector<1x128xi1>, vector<1x128xf32>
    %cst_30 = arith.constant dense<0x7F800000> : vector<1xf32>
    %77 = vector.multi_reduction <minimumf>, %76, %cst_30 [1] : vector<1x128xf32> to vector<1xf32>
    %78 = vector.shape_cast %77 : vector<1xf32> to vector<1x1xf32>
    %79 = vector.broadcast %78 : vector<1x1xf32> to vector<1x128xf32>
    %80 = arith.cmpf oeq, %8, %79 : vector<1x128xf32>
    %cst_31 = arith.constant 0.000000e+00 : f32
    %81 = vector.broadcast %cst_31 : f32 to vector<1x128xf32>
    %82 = arith.select %80, %21, %81 : vector<1x128xi1>, vector<1x128xf32>
    %cst_32 = arith.constant 5.000000e-01 : f32
    %83 = vector.broadcast %cst_32 : f32 to vector<1x1xf32>
    %84 = arith.cmpf olt, %57, %83 : vector<1x1xf32>
    %cst_33 = arith.constant 8.000000e-01 : f32
    %85 = vector.broadcast %cst_33 : f32 to vector<1x1xf32>
    %86 = arith.mulf %85, %63 : vector<1x1xf32>
    %87 = arith.cmpf ogt, %86, %69 : vector<1x1xf32>
    %88 = arith.ori %84, %87 : vector<1x1xi1>
    %cst_34 = arith.constant 1.000000e+00 : f32
    %cst_35 = arith.constant 0.000000e+00 : f32
    %89 = vector.broadcast %cst_34 : f32 to vector<1x1xf32>
    %90 = vector.broadcast %cst_35 : f32 to vector<1x1xf32>
    %91 = arith.select %88, %89, %90 : vector<1x1xi1>, vector<1x1xf32>
    %cst_36 = arith.constant 1.000000e+00 : f32
    %92 = vector.broadcast %cst_36 : f32 to vector<1x1xf32>
    %93 = arith.subf %92, %9 : vector<1x1xf32>
    %cst_37 = arith.constant 1.000000e+00 : f32
    %94 = vector.broadcast %cst_37 : f32 to vector<1x1xf32>
    %95 = arith.subf %94, %91 : vector<1x1xf32>
    %96 = arith.mulf %93, %95 : vector<1x1xf32>
    %97 = vector.broadcast %96 : vector<1x1xf32> to vector<1x128xf32>
    %98 = arith.mulf %97, %82 : vector<1x128xf32>
    %99 = arith.addf %3, %98 : vector<1x128xf32>
    %100 = arith.maximumf %9, %91 : vector<1x1xf32>
    %101 = vector.shape_cast %99 : vector<1x128xf32> to vector<1x128xf32>
    %102 = vector.broadcast %101 : vector<1x128xf32> to vector<8x128xf32>
    %103 = arith.truncf %102 : vector<8x128xf32> to vector<8x128xbf16>
    %cst_38 = arith.constant dense<0.000000e+00> : vector<8x128xf32>
    %104 = tpu.matmul %103, %0, %cst_38 {dimension_numbers = #tpu.dot_dimension_numbers<[1], [0], [0], [1], [0, 0, 1, 1], [], []>} : vector<8x128xbf16>, vector<128x128xbf16>, vector<8x128xf32> -> vector<8x128xf32>
    %105 = vector.extract_strided_slice %104 {offsets = [0, 0], sizes = [1, 128], strides = [1, 1]} : vector<8x128xf32> to vector<1x128xf32>
    %cst_39 = arith.constant 0.000000e+00 : f32
    %106 = vector.broadcast %cst_39 : f32 to vector<1x128xf32>
    %107 = arith.cmpf ogt, %105, %106 : vector<1x128xf32>
    %cst_40 = arith.constant 5.000000e-01 : f32
    %108 = vector.broadcast %cst_40 : f32 to vector<1x128xf32>
    %109 = arith.cmpf olt, %99, %108 : vector<1x128xf32>
    %110 = arith.andi %107, %109 : vector<1x128xi1>
    %cst_41 = arith.constant 0.000000e+00 : f32
    %111 = vector.broadcast %cst_41 : f32 to vector<1x128xf32>
    %112 = arith.select %110, %4, %111 : vector<1x128xi1>, vector<1x128xf32>
    %113 = arith.addf %99, %112 : vector<1x128xf32>
    %c1 = arith.constant 1 : index
    %c0_42 = arith.constant 0 : index
    %c0_43 = arith.constant 0 : index
    %114 = vector.load %arg3[%c1, %c0_42, %c0_43] : memref<3x32x16xbf16, #tpu.memory_space<vmem>>, vector<1x32x16xbf16>
    %115 = vector.shape_cast %114 : vector<1x32x16xbf16> to vector<32x16xbf16>
    %c1_44 = arith.constant 1 : index
    %c0_45 = arith.constant 0 : index
    %c0_46 = arith.constant 0 : index
    %116 = vector.load %arg4[%c1_44, %c0_45, %c0_46] : memref<3x72x1xf32, #tpu.memory_space<vmem>>, vector<1x72x1xf32>
    %117 = vector.shape_cast %116 : vector<1x72x1xf32> to vector<72x1xf32>
    %118 = vector.extract_strided_slice %117 {offsets = [0, 0], sizes = [32, 1], strides = [1, 1]} : vector<72x1xf32> to vector<32x1xf32>
    %119 = vector.extract_strided_slice %117 {offsets = [32, 0], sizes = [32, 1], strides = [1, 1]} : vector<72x1xf32> to vector<32x1xf32>
    %120 = vector.extract_strided_slice %117 {offsets = [64, 0], sizes = [1, 1], strides = [1, 1]} : vector<72x1xf32> to vector<1x1xf32>
    %cst_47 = arith.constant dense<0.000000e+00> : vector<32x128xf32>
    %121 = tpu.matmul %115, %1, %cst_47 {dimension_numbers = #tpu.dot_dimension_numbers<[1], [0], [0], [1], [0, 0, 1, 1], [], []>} : vector<32x16xbf16>, vector<16x128xbf16>, vector<32x128xf32> -> vector<32x128xf32>
    %122 = vector.broadcast %113 : vector<1x128xf32> to vector<32x128xf32>
    %123 = arith.mulf %121, %122 : vector<32x128xf32>
    %124 = arith.truncf %123 : vector<32x128xf32> to vector<32x128xbf16>
    %cst_48 = arith.constant dense<0.000000e+00> : vector<32x128xf32>
    %125 = tpu.matmul %124, %0, %cst_48 {dimension_numbers = #tpu.dot_dimension_numbers<[1], [0], [0], [1], [0, 0, 1, 1], [], []>} : vector<32x128xbf16>, vector<128x128xbf16>, vector<32x128xf32> -> vector<32x128xf32>
    %126 = vector.broadcast %118 : vector<32x1xf32> to vector<32x128xf32>
    %127 = arith.addf %125, %126 : vector<32x128xf32>
    %cst_49 = arith.constant 0.000000e+00 : f32
    %128 = vector.broadcast %cst_49 : f32 to vector<32x128xf32>
    %129 = arith.maximumf %127, %128 : vector<32x128xf32>
    %130 = vector.broadcast %119 : vector<32x1xf32> to vector<32x128xf32>
    %131 = arith.mulf %129, %130 : vector<32x128xf32>
    %cst_50 = arith.constant dense<0.000000e+00> : vector<128xf32>
    %132 = vector.multi_reduction <add>, %131, %cst_50 [0] : vector<32x128xf32> to vector<128xf32>
    %133 = vector.shape_cast %132 : vector<128xf32> to vector<1x128xf32>
    %134 = arith.mulf %133, %113 : vector<1x128xf32>
    %135 = vector.shape_cast %134 : vector<1x128xf32> to vector<1x128xf32>
    %136 = vector.broadcast %135 : vector<1x128xf32> to vector<8x128xf32>
    %137 = arith.truncf %136 : vector<8x128xf32> to vector<8x128xbf16>
    %cst_51 = arith.constant dense<0.000000e+00> : vector<8x128xf32>
    %138 = tpu.matmul %137, %0, %cst_51 {dimension_numbers = #tpu.dot_dimension_numbers<[1], [0], [0], [1], [0, 0, 1, 1], [], []>} : vector<8x128xbf16>, vector<128x128xbf16>, vector<8x128xf32> -> vector<8x128xf32>
    %139 = vector.extract_strided_slice %138 {offsets = [0, 0], sizes = [1, 128], strides = [1, 1]} : vector<8x128xf32> to vector<1x128xf32>
    %140 = vector.broadcast %120 : vector<1x1xf32> to vector<1x128xf32>
    %141 = arith.addf %139, %140 : vector<1x128xf32>
    %142 = arith.negf %141 : vector<1x128xf32>
    %143 = math.exp %142 : vector<1x128xf32>
    %cst_52 = arith.constant 1.000000e+00 : f32
    %144 = vector.broadcast %cst_52 : f32 to vector<1x128xf32>
    %145 = arith.addf %144, %143 : vector<1x128xf32>
    %146 = arith.divf %144, %145 : vector<1x128xf32>
    %cst_53 = arith.constant dense<0.000000e+00> : vector<1xf32>
    %147 = vector.multi_reduction <add>, %112, %cst_53 [1] : vector<1x128xf32> to vector<1xf32>
    %148 = vector.shape_cast %147 : vector<1xf32> to vector<1x1xf32>
    %cst_54 = arith.constant 5.000000e-01 : f32
    %149 = vector.broadcast %cst_54 : f32 to vector<1x128xf32>
    %150 = arith.cmpf ogt, %99, %149 : vector<1x128xf32>
    %cst_55 = arith.constant -1.000000e+00 : f32
    %151 = vector.broadcast %cst_55 : f32 to vector<1x128xf32>
    %152 = arith.select %150, %146, %151 : vector<1x128xi1>, vector<1x128xf32>
    %cst_56 = arith.constant dense<0xFF800000> : vector<1xf32>
    %153 = vector.multi_reduction <maximumf>, %152, %cst_56 [1] : vector<1x128xf32> to vector<1xf32>
    %154 = vector.shape_cast %153 : vector<1xf32> to vector<1x1xf32>
    %cst_57 = arith.constant 5.000000e-01 : f32
    %155 = vector.broadcast %cst_57 : f32 to vector<1x128xf32>
    %156 = arith.cmpf ogt, %112, %155 : vector<1x128xf32>
    %cst_58 = arith.constant -1.000000e+00 : f32
    %157 = vector.broadcast %cst_58 : f32 to vector<1x128xf32>
    %158 = arith.select %156, %146, %157 : vector<1x128xi1>, vector<1x128xf32>
    %cst_59 = arith.constant dense<0xFF800000> : vector<1xf32>
    %159 = vector.multi_reduction <maximumf>, %158, %cst_59 [1] : vector<1x128xf32> to vector<1xf32>
    %160 = vector.shape_cast %159 : vector<1xf32> to vector<1x1xf32>
    %161 = vector.broadcast %160 : vector<1x1xf32> to vector<1x128xf32>
    %162 = arith.cmpf oge, %158, %161 : vector<1x128xf32>
    %cst_60 = arith.constant 5.000000e-01 : f32
    %163 = vector.broadcast %cst_60 : f32 to vector<1x128xf32>
    %164 = arith.cmpf ogt, %112, %163 : vector<1x128xf32>
    %165 = arith.andi %162, %164 : vector<1x128xi1>
    %cst_61 = arith.constant 1.280000e+02 : f32
    %166 = vector.broadcast %cst_61 : f32 to vector<1x128xf32>
    %167 = arith.select %165, %8, %166 : vector<1x128xi1>, vector<1x128xf32>
    %cst_62 = arith.constant dense<0x7F800000> : vector<1xf32>
    %168 = vector.multi_reduction <minimumf>, %167, %cst_62 [1] : vector<1x128xf32> to vector<1xf32>
    %169 = vector.shape_cast %168 : vector<1xf32> to vector<1x1xf32>
    %170 = vector.broadcast %169 : vector<1x1xf32> to vector<1x128xf32>
    %171 = arith.cmpf oeq, %8, %170 : vector<1x128xf32>
    %cst_63 = arith.constant 0.000000e+00 : f32
    %172 = vector.broadcast %cst_63 : f32 to vector<1x128xf32>
    %173 = arith.select %171, %112, %172 : vector<1x128xi1>, vector<1x128xf32>
    %cst_64 = arith.constant 5.000000e-01 : f32
    %174 = vector.broadcast %cst_64 : f32 to vector<1x1xf32>
    %175 = arith.cmpf olt, %148, %174 : vector<1x1xf32>
    %cst_65 = arith.constant 8.000000e-01 : f32
    %176 = vector.broadcast %cst_65 : f32 to vector<1x1xf32>
    %177 = arith.mulf %176, %154 : vector<1x1xf32>
    %178 = arith.cmpf ogt, %177, %160 : vector<1x1xf32>
    %179 = arith.ori %175, %178 : vector<1x1xi1>
    %cst_66 = arith.constant 1.000000e+00 : f32
    %cst_67 = arith.constant 0.000000e+00 : f32
    %180 = vector.broadcast %cst_66 : f32 to vector<1x1xf32>
    %181 = vector.broadcast %cst_67 : f32 to vector<1x1xf32>
    %182 = arith.select %179, %180, %181 : vector<1x1xi1>, vector<1x1xf32>
    %cst_68 = arith.constant 1.000000e+00 : f32
    %183 = vector.broadcast %cst_68 : f32 to vector<1x1xf32>
    %184 = arith.subf %183, %100 : vector<1x1xf32>
    %cst_69 = arith.constant 1.000000e+00 : f32
    %185 = vector.broadcast %cst_69 : f32 to vector<1x1xf32>
    %186 = arith.subf %185, %182 : vector<1x1xf32>
    %187 = arith.mulf %184, %186 : vector<1x1xf32>
    %188 = vector.broadcast %187 : vector<1x1xf32> to vector<1x128xf32>
    %189 = arith.mulf %188, %173 : vector<1x128xf32>
    %190 = arith.addf %99, %189 : vector<1x128xf32>
    %191 = vector.shape_cast %190 : vector<1x128xf32> to vector<1x128xf32>
    %192 = vector.broadcast %191 : vector<1x128xf32> to vector<8x128xf32>
    %193 = arith.truncf %192 : vector<8x128xf32> to vector<8x128xbf16>
    %cst_70 = arith.constant dense<0.000000e+00> : vector<8x128xf32>
    %194 = tpu.matmul %193, %0, %cst_70 {dimension_numbers = #tpu.dot_dimension_numbers<[1], [0], [0], [1], [0, 0, 1, 1], [], []>} : vector<8x128xbf16>, vector<128x128xbf16>, vector<8x128xf32> -> vector<8x128xf32>
    %195 = vector.extract_strided_slice %194 {offsets = [0, 0], sizes = [1, 128], strides = [1, 1]} : vector<8x128xf32> to vector<1x128xf32>
    %cst_71 = arith.constant 0.000000e+00 : f32
    %196 = vector.broadcast %cst_71 : f32 to vector<1x128xf32>
    %197 = arith.cmpf ogt, %195, %196 : vector<1x128xf32>
    %cst_72 = arith.constant 5.000000e-01 : f32
    %198 = vector.broadcast %cst_72 : f32 to vector<1x128xf32>
    %199 = arith.cmpf olt, %190, %198 : vector<1x128xf32>
    %200 = arith.andi %197, %199 : vector<1x128xi1>
    %cst_73 = arith.constant 0.000000e+00 : f32
    %201 = vector.broadcast %cst_73 : f32 to vector<1x128xf32>
    %202 = arith.select %200, %5, %201 : vector<1x128xi1>, vector<1x128xf32>
    %203 = arith.addf %190, %202 : vector<1x128xf32>
    %c2 = arith.constant 2 : index
    %c0_74 = arith.constant 0 : index
    %c0_75 = arith.constant 0 : index
    %204 = vector.load %arg3[%c2, %c0_74, %c0_75] : memref<3x32x16xbf16, #tpu.memory_space<vmem>>, vector<1x32x16xbf16>
    %205 = vector.shape_cast %204 : vector<1x32x16xbf16> to vector<32x16xbf16>
    %c2_76 = arith.constant 2 : index
    %c0_77 = arith.constant 0 : index
    %c0_78 = arith.constant 0 : index
    %206 = vector.load %arg4[%c2_76, %c0_77, %c0_78] : memref<3x72x1xf32, #tpu.memory_space<vmem>>, vector<1x72x1xf32>
    %207 = vector.shape_cast %206 : vector<1x72x1xf32> to vector<72x1xf32>
    %208 = vector.extract_strided_slice %207 {offsets = [0, 0], sizes = [32, 1], strides = [1, 1]} : vector<72x1xf32> to vector<32x1xf32>
    %209 = vector.extract_strided_slice %207 {offsets = [32, 0], sizes = [32, 1], strides = [1, 1]} : vector<72x1xf32> to vector<32x1xf32>
    %210 = vector.extract_strided_slice %207 {offsets = [64, 0], sizes = [1, 1], strides = [1, 1]} : vector<72x1xf32> to vector<1x1xf32>
    %cst_79 = arith.constant dense<0.000000e+00> : vector<32x128xf32>
    %211 = tpu.matmul %205, %1, %cst_79 {dimension_numbers = #tpu.dot_dimension_numbers<[1], [0], [0], [1], [0, 0, 1, 1], [], []>} : vector<32x16xbf16>, vector<16x128xbf16>, vector<32x128xf32> -> vector<32x128xf32>
    %212 = vector.broadcast %203 : vector<1x128xf32> to vector<32x128xf32>
    %213 = arith.mulf %211, %212 : vector<32x128xf32>
    %214 = arith.truncf %213 : vector<32x128xf32> to vector<32x128xbf16>
    %cst_80 = arith.constant dense<0.000000e+00> : vector<32x128xf32>
    %215 = tpu.matmul %214, %0, %cst_80 {dimension_numbers = #tpu.dot_dimension_numbers<[1], [0], [0], [1], [0, 0, 1, 1], [], []>} : vector<32x128xbf16>, vector<128x128xbf16>, vector<32x128xf32> -> vector<32x128xf32>
    %216 = vector.broadcast %208 : vector<32x1xf32> to vector<32x128xf32>
    %217 = arith.addf %215, %216 : vector<32x128xf32>
    %cst_81 = arith.constant 0.000000e+00 : f32
    %218 = vector.broadcast %cst_81 : f32 to vector<32x128xf32>
    %219 = arith.maximumf %217, %218 : vector<32x128xf32>
    %220 = vector.broadcast %209 : vector<32x1xf32> to vector<32x128xf32>
    %221 = arith.mulf %219, %220 : vector<32x128xf32>
    %cst_82 = arith.constant dense<0.000000e+00> : vector<128xf32>
    %222 = vector.multi_reduction <add>, %221, %cst_82 [0] : vector<32x128xf32> to vector<128xf32>
    %223 = vector.shape_cast %222 : vector<128xf32> to vector<1x128xf32>
    %224 = arith.mulf %223, %203 : vector<1x128xf32>
    %225 = vector.shape_cast %224 : vector<1x128xf32> to vector<1x128xf32>
    %226 = vector.broadcast %225 : vector<1x128xf32> to vector<8x128xf32>
    %227 = arith.truncf %226 : vector<8x128xf32> to vector<8x128xbf16>
    %cst_83 = arith.constant dense<0.000000e+00> : vector<8x128xf32>
    %228 = tpu.matmul %227, %0, %cst_83 {dimension_numbers = #tpu.dot_dimension_numbers<[1], [0], [0], [1], [0, 0, 1, 1], [], []>} : vector<8x128xbf16>, vector<128x128xbf16>, vector<8x128xf32> -> vector<8x128xf32>
    %229 = vector.extract_strided_slice %228 {offsets = [0, 0], sizes = [1, 128], strides = [1, 1]} : vector<8x128xf32> to vector<1x128xf32>
    %230 = vector.broadcast %210 : vector<1x1xf32> to vector<1x128xf32>
    %231 = arith.addf %229, %230 : vector<1x128xf32>
    %232 = arith.negf %231 : vector<1x128xf32>
    %233 = math.exp %232 : vector<1x128xf32>
    %cst_84 = arith.constant 1.000000e+00 : f32
    %234 = vector.broadcast %cst_84 : f32 to vector<1x128xf32>
    %235 = arith.addf %234, %233 : vector<1x128xf32>
    %236 = arith.divf %234, %235 : vector<1x128xf32>
    %237 = arith.mulf %236, %6 : vector<1x128xf32>
    %c0_85 = arith.constant 0 : index
    %c0_86 = arith.constant 0 : index
    %238 = vector.load %arg5[%c0_85, %c0_86] : memref<1x128xf32, #tpu.memory_space<vmem>>, vector<1x128xf32>
    tpu.vector_store %arg5[%c0_85, %c0_86], %237 {strides = array<i32>} : memref<1x128xf32, #tpu.memory_space<vmem>>, vector<1x128xf32>,
    %c0_87 = arith.constant 0 : index
    %c0_88 = arith.constant 0 : index
    %239 = vector.load %arg6[%c0_87, %c0_88] : memref<1x128xf32, #tpu.memory_space<vmem>>, vector<1x128xf32>
    tpu.vector_store %arg6[%c0_87, %c0_88], %202 {strides = array<i32>} : memref<1x128xf32, #tpu.memory_space<vmem>>, vector<1x128xf32>,
    return
  }
}

</mosaic_0001>

<bundles_post_ra>
// kernel: tpu_custom_call.1
= control target key start
LH: loop header
LB: loop body
LE: loop exit
PB: predicated region body
PF: predicated region fallthrough
CT: control target
= control target key end

     0   :  { %12 = vsyncpa [#allocation3], 0  ;;  %vm147_vm0 = vcmask 130048   ;;  %v967_v4 = vmov 0   ;;  %s1296_s0 = inlined_call_operand.vmem [shape: bf16[16,128], index: 0, kind: input, shape index: {}]   ;;  %s1297_s1 = inlined_call_operand.vmem [shape: bf16[128,128], index: 1, kind: input, shape index: {}]   ;;  %s1298_s2 = inlined_call_operand.vmem [shape: f32[8,128], index: 2, kind: input, shape index: {}]   ;;  %s1299_s3 = inlined_call_operand.vmem [shape: bf16[3,32,16], index: 3, kind: input, shape index: {}]   ;;  %s1300_s4 = inlined_call_operand.vmem [shape: f32[3,72,1], index: 4, kind: input, shape index: {}]   ;;  %s1301_s5 = inlined_call_operand.hbm [shape: f32[1,128], index: 5, kind: output, shape index: {0}]   ;;  %s1302_s6 = inlined_call_operand.hbm [shape: f32[1,128], index: 6, kind: output, shape index: {1}]  }
   0x1   :  { %v1009_v0 = vld [vmem:[%s1297_s1 + $0x38] sm:$0xff]  ;;  %v889_v1 = vld [vmem:[%s1296_s0] sm:$0xff]  ;;  %v1021_v3 = vld [vmem:[%s1297_s1 + $0x30] sm:$0xff]  ;;  %902 = vset.pattern.permute.xlu2 %v967_v4  ;;  %900 = vset.pattern.permute.xlu0 %v967_v4 }
   0x2   :  { %v890_v2 = vld [vmem:[%s1299_s3] sm:$0xff]  ;;  %97 = vmatpush.bf16.msra.mxu0 %v1009_v0  ;;  %161 = vmatpush.bf16.msra.mxu2 %v889_v1 }
   0x3   :  { %200 = vmatpush.bf16.msra.mxu1 %v1009_v0  ;;  %v126_v5 = vld [vmem:[%s1300_s4 + $0x20] sm:$0xff]  ;;  %901 = vset.pattern.permute.xlu1 %v967_v4 }
   0x4   :  { %225 = vperm.xlu2 %902, %v126_v5  }
   0x5   :  { %830 = vmatmul.msk.bf16.vlgmr.msra.gmra.mxu2 %vm147_vm0, %v890_v2 }
   0x6   :  { %13 = vsyncpa [#allocation5], 0  ;;  %98 = vmatpush.bf16.msra.mxu0 %v1021_v3  ;;  %v1032_v6 = vld [vmem:[%s1297_s1 + $0x28] sm:$0xff]  ;;  %259 = vmatpush.bf16.msra.mxu3 %v1009_v0  ;;  %v1041_v7 = vld [vmem:[%s1297_s1 + $0x20] sm:$0xff]  ;;  %vm297_vm3 = vcmask 1040384   ;;  %s772_s28 = sshll.u32 %s1302_s6, 4  ;;  %s773_s28 = int_to_ptr.hbm [resolvable:$true] %s772_s28 }
   0x7   :  { %201 = vmatpush.bf16.msra.mxu1 %v1021_v3  ;;  %425 = vmatpush.bf16.msrb.mxu2 %v1009_v0  ;;  %v127_v8 = vld [vmem:[%s1300_s4 + $0x28] sm:$0xff]  ;;  %v1053_v9 = vld [vmem:[%s1297_s1 + $0x18] sm:$0xff]  ;;  %v1065_v11 = vld [vmem:[%s1297_s1 + $0x10] sm:$0xff]  ;;  %s970_s6 = smov [#allocation2]   ;;  %s761_s7 = sshll.u32 %s1301_s5, 4  ;;  %s762_s7 = int_to_ptr.hbm [resolvable:$true] %s761_s7 }
   0x8   :  { %v891_v10 = vld [vmem:[%s1299_s3 + $0x8] sm:$0xff]  ;;  %v130_v12 = vld [vmem:[%s1300_s4 + $0x40] sm:$0xff]  ;;  %v124_v19 = vld [vmem:[%s1300_s4 + $0x10] sm:$0xff]  ;;  %s759_s29 = sshll.u32 %s970_s6, 4  ;;  %s760_s29 = int_to_ptr.vmem [resolvable:$true] %s759_s29 }
   0x9   :  { %v1078_v13 = vld [vmem:[%s1297_s1 + $0x8] sm:$0xff]  ;;  %v1083_v14 = vld [vmem:[%s1298_s2] sm:$0xff]  ;;  %192 = vperm.xlu1 %901, %v124_v19   ;;  %v125_v21 = vld [vmem:[%s1300_s4 + $0x18] sm:$0xff] }
   0xa   :  { %99 = vmatpush.bf16.msra.mxu0 %v1032_v6  ;;  %260 = vmatpush.bf16.msra.mxu3 %v1021_v3  ;;  %v47_v15 = vperm.slane %v1083_v14, 0  ;;  %v1093_v16 = vld [vmem:[%s1297_s1] sm:$0xff]  ;;  %v123_v20 = vld [vmem:[%s1300_s4 + $0x8] sm:$0xff]  ;;  %v128_v23 = vld [vmem:[%s1300_s4 + $0x30] sm:$0xff]  ;;  %vm111_vm1 = vcmp.lt.f32.partialorder %v1083_v14, 0.5  ;;  %v114_v26 = vrot.slane %v1083_v14, 1 }
   0xb   :  { %202 = vmatpush.bf16.msra.mxu1 %v1032_v6  ;;  %426 = vmatpush.bf16.msrb.mxu2 %v1021_v3  ;;  %v122_v18 = vld [vmem:[%s1300_s4] sm:$0xff]  ;;  %v129_v24 = vld [vmem:[%s1300_s4 + $0x38] sm:$0xff]  ;;  %vm301_vm8 = vcmp.gt.f32.partialorder %v1083_v14, 0.5 }
   0xc   :  { %230 = vperm.xlu2 %902, %v127_v8   ;;  %v48_v17 = vpack.c.bf16 %v47_v15, %v47_v15  ;;  %182 = vperm.xlu0 %900, %v122_v18  }
   0xe   :  { %100 = vmatpush.bf16.msra.mxu0 %v1041_v7  ;;  %261 = vmatpush.bf16.msra.mxu3 %v1032_v6 }
   0xf   :  { %203 = vmatpush.bf16.msra.mxu1 %v1041_v7  ;;  %427 = vmatpush.bf16.msrb.mxu2 %v1032_v6 }
  0x11   :  { %197 = vperm.xlu1 %901, %v125_v21  }
  0x12   :  { %101 = vmatpush.bf16.msra.mxu0 %v1053_v9  ;;  %262 = vmatpush.bf16.msra.mxu3 %v1041_v7 }
  0x13   :  { %204 = vmatpush.bf16.msra.mxu1 %v1053_v9  ;;  %428 = vmatpush.bf16.msrb.mxu2 %v1041_v7 }
  0x14   :  { %274 = vperm.xlu2 %902, %v130_v12   ;;  %187 = vperm.xlu0 %900, %v123_v20  }
  0x15   :  { %831 = vmatmul.msk.bf16.gmra.mxu2 %vm147_vm0, %v891_v10 }
  0x16   :  { %102 = vmatpush.bf16.msra.mxu0 %v1065_v11  ;;  %263 = vmatpush.bf16.msra.mxu3 %v1053_v9 }
  0x17   :  { %205 = vmatpush.bf16.msra.mxu1 %v1065_v11  ;;  %429 = vmatpush.bf16.msrb.mxu2 %v1053_v9 }
  0x19   :  { %240 = vperm.xlu1 %901, %v129_v24  }
  0x1a   :  { %103 = vmatpush.bf16.msra.mxu0 %v1078_v13  ;;  %264 = vmatpush.bf16.msra.mxu3 %v1065_v11 }
  0x1b   :  { %206 = vmatpush.bf16.msra.mxu1 %v1078_v13  ;;  %430 = vmatpush.bf16.msrb.mxu2 %v1065_v11 }
  0x1c   :  { %235 = vperm.xlu0 %900, %v128_v23  }
  0x1e   :  { %104 = vmatpush.bf16.msra.mxu0 %v1093_v16  ;;  %265 = vmatpush.bf16.msra.mxu3 %v1078_v13 }
  0x1f   :  { %207 = vmatpush.bf16.msra.mxu1 %v1093_v16  ;;  %431 = vmatpush.bf16.msrb.mxu2 %v1078_v13 }
  0x21   :  { %105 = vmatmul.bf16.vlgmr.msra.gmra.mxu0 %v48_v17 }
  0x22   :  { %386 = vmatpush.bf16.msrb.mxu0 %v889_v1  ;;  %266 = vmatpush.bf16.msra.mxu3 %v1093_v16 }
  0x23   :  { %330 = vmatpush.bf16.msrb.mxu1 %v1009_v0  ;;  %432 = vmatpush.bf16.msrb.mxu2 %v1093_v16 }
  0x26   :  { %613 = vmatpush.bf16.msra.mxu0 %v889_v1  ;;  %484 = vmatpush.bf16.msrb.mxu3 %v1009_v0 }
  0x27   :  { %331 = vmatpush.bf16.msrb.mxu1 %v1021_v3  ;;  %652 = vmatpush.bf16.msra.mxu2 %v1009_v0 }
  0x2a   :  { %485 = vmatpush.bf16.msrb.mxu3 %v1021_v3 }
  0x2b   :  { %332 = vmatpush.bf16.msrb.mxu1 %v1032_v6  ;;  %653 = vmatpush.bf16.msra.mxu2 %v1021_v3 }
  0x2e   :  { %486 = vmatpush.bf16.msrb.mxu3 %v1032_v6 }
  0x2f   :  { %333 = vmatpush.bf16.msrb.mxu1 %v1041_v7  ;;  %654 = vmatpush.bf16.msra.mxu2 %v1032_v6 }
  0x32   :  { %487 = vmatpush.bf16.msrb.mxu3 %v1041_v7 }
  0x33   :  { %334 = vmatpush.bf16.msrb.mxu1 %v1053_v9  ;;  %655 = vmatpush.bf16.msra.mxu2 %v1041_v7 }
  0x36   :  { %488 = vmatpush.bf16.msrb.mxu3 %v1053_v9 }
  0x37   :  { %335 = vmatpush.bf16.msrb.mxu1 %v1065_v11  ;;  %656 = vmatpush.bf16.msra.mxu2 %v1053_v9 }
  0x3a   :  { %489 = vmatpush.bf16.msrb.mxu3 %v1065_v11 }
  0x3b   :  { %336 = vmatpush.bf16.msrb.mxu1 %v1078_v13  ;;  %657 = vmatpush.bf16.msra.mxu2 %v1065_v11 }
  0x3e   :  { %490 = vmatpush.bf16.msrb.mxu3 %v1078_v13 }
  0x3f   :  { %337 = vmatpush.bf16.msrb.mxu1 %v1093_v16  ;;  %658 = vmatpush.bf16.msra.mxu2 %v1078_v13 }
  0x42   :  { %491 = vmatpush.bf16.msrb.mxu3 %v1093_v16 }
  0x43   :  { %659 = vmatpush.bf16.msra.mxu2 %v1093_v16 }
  0x5e   :  { %v226_v45 = vpop.permute.xlu2 %225 }
  0x66   :  { %v231_v55 = vpop.permute.xlu2 %230 }
  0x7b   :  { %v193_v43 = vpop.permute.xlu1 %192 }
  0x7e   :  { %v183_v42 = vpop.permute.xlu0 %182 }
  0x83   :  { %v198_v51 = vpop.permute.xlu1 %197 }
  0x86   :  { %v188_v46 = vpop.permute.xlu0 %187 }
  0x88   :  { %v163_v22 = vpop.f32.mrf.mxu2 }
  0x8b   :  { %v241_v1 = vpop.permute.xlu1 %240 }
  0x8e   :  { %v236_v57 = vpop.permute.xlu0 %235 }
  0x90   :  { %v165_v25 = vpop.f32.mrf.mxu2 }
  0x98   :  { %v168_v35 = vpop.f32.mrf.mxu2 }
  0x9e   :  { %v106_v27 = vpop.f32.mrf.mxu0 }
  0x9f   :  { %vm110_vm2 = vcmp.gt.f32.partialorder %v106_v27, 0.0 }
  0xa0   :  { %vm112_vm4 = vmand %vm110_vm2, %vm111_vm1  ;;  %v170_v37 = vpop.f32.mrf.mxu2 }
  0xa1   :  { %v1150_v28 = vsel %vm112_vm4, %v114_v26, 0.0 }
  0xa2   :  { %v117_v29 = vadd.f32 %v1150_v28, %v1083_v14  ;;  %v298_v30 = vsel %vm297_vm3, %v1150_v28, 0.0  ;;  %vm306_vm10 = vcmp.gt.f32.partialorder %v1150_v28, 0.5 }
  0xa3   :  { %299 = vadd.xlane.f32.xlu2 %v298_v30 }
  0xa4   :  { %v173_v31 = vperm.slane %v117_v29, 0 }
  0xa6   :  { %v108_v32 = vpop.f32.mrf.mxu0  ;;  %v174_v33 = vmul.f32 %v173_v31, %v163_v22  ;;  %v175_v34 = vmul.f32 %v173_v31, %v165_v25  ;;  %v177_v38 = vmul.f32 %v173_v31, %v170_v37  ;;  %v176_v39 = vmul.f32 %v173_v31, %v168_v35  ;;  %v275_v22 = vpop.permute.xlu2 %274  ;;  %v837_v37 = vld [vmem:[%s1300_s4 + $0x48] sm:$0xff] }
  0xa8   :  { %v178_v36 = vpack.c.bf16 %v175_v34, %v174_v33  ;;  %v179_v40 = vpack.c.bf16 %v177_v38, %v176_v39  ;;  %v838_v38 = vld [vmem:[%s1300_s4 + $0x50] sm:$0xff]  ;;  %v840_v39 = vld [vmem:[%s1300_s4 + $0x60] sm:$0xff] }
  0xaa   :  { %208 = vmatmul.bf16.vlgmr.msra.gmra.mxu1 %v178_v36 }
  0xab   :  { %555 = vmatpush.bf16.msra.mxu1 %v1009_v0 }
  0xaf   :  { %556 = vmatpush.bf16.msra.mxu1 %v1021_v3 }
  0xb3   :  { %557 = vmatpush.bf16.msra.mxu1 %v1032_v6 }
  0xb7   :  { %558 = vmatpush.bf16.msra.mxu1 %v1041_v7 }
  0xba   :  { %213 = vmatmul.bf16.gmra.mxu1 %v179_v40  ;;  %v841_v40 = vld [vmem:[%s1300_s4 + $0x68] sm:$0xff] }
  0xbb   :  { %559 = vmatpush.bf16.msra.mxu1 %v1053_v9 }
  0xbf   :  { %560 = vmatpush.bf16.msra.mxu1 %v1065_v11 }
  0xc3   :  { %561 = vmatpush.bf16.msra.mxu1 %v1078_v13 }
  0xc7   :  { %562 = vmatpush.bf16.msra.mxu1 %v1093_v16 }
 0x127   :  { %v209_v41 = vpop.f32.mrf.mxu1 }
 0x128   :  { %v210_v49 = vadd.f32 %v209_v41, %v183_v42  ;;  %v842_v41 = vld [vmem:[%s1300_s4 + $0x70] sm:$0xff]  ;;  %v844_v42 = vld [vmem:[%s1300_s4 + $0x80] sm:$0xff] }
 0x12a   :  { %v219_v53 = vmax.f32 %v210_v49, 0.0 }
 0x12c   :  { %v243_v59 = vmul.f32 %v226_v45, %v219_v53  ;;  %v893_v53 = vld [vmem:[%s1299_s3 + $0x18] sm:$0xff] }
 0x12f   :  { %v211_v44 = vpop.f32.mrf.mxu1 }
 0x130   :  { %v212_v47 = vadd.f32 %v211_v44, %v188_v46  ;;  %v44_v44 = vlaneseq }
 0x132   :  { %v220_v52 = vmax.f32 %v212_v47, 0.0  ;;  %v45_v45 = vand.u32 127, %v44_v44 }
 0x134   :  { %v244_v56 = vmul.f32 %v231_v55, %v220_v52  ;;  %v1199_v46 = vcvt.s32.f32 %v45_v45  ;;  %v843_v52 = vld [vmem:[%s1300_s4 + $0x78] sm:$0xff] }
 0x136   :  { %v247_v62 = vadd.f32 %v244_v56, %v243_v59  ;;  %v300_v56 = vpop.xlane.xlu2 %299 }
 0x137   :  { %v214_v48 = vpop.f32.mrf.mxu1  ;;  %vm319_vm14 = vcmp.lt.f32.partialorder %v300_v56, 0.5 }
 0x138   :  { %v215_v50 = vadd.f32 %v214_v48, %v193_v43  ;;  %v845_v43 = vld [vmem:[%s1300_s4 + $0x88] sm:$0xff] }
 0x13a   :  { %v221_v54 = vmax.f32 %v215_v50, 0.0  ;;  %v892_v50 = vld [vmem:[%s1299_s3 + $0x10] sm:$0xff] }
 0x13b   :  { %854 = vmatmul.msk.bf16.vlgmr.msrb.gmra.mxu0 %vm147_vm0, %v892_v50 }
 0x13c   :  { %v245_v60 = vmul.f32 %v236_v57, %v221_v54  ;;  %v968_v57 = vmov 0.0  }
 0x13e   :  { %v248_v2 = vadd.f32 %v247_v62, %v245_v60 }
 0x13f   :  { %v216_v58 = vpop.f32.mrf.mxu1 }
 0x140   :  { %v217_v61 = vadd.f32 %v216_v58, %v198_v51  ;;  %v839_v51 = vld [vmem:[%s1300_s4 + $0x58] sm:$0xff] }
 0x142   :  { %v222_v63 = vmax.f32 %v217_v61, 0.0 }
 0x144   :  { %v246_v4 = vmul.f32 %v241_v1, %v222_v63 }
 0x146   :  { %v249_v5 = vadd.f32 %v248_v2, %v246_v4 }
 0x148   :  { %v250_v8 = vrot.slane %v249_v5, 4 }
 0x14a   :  { %v251_v10 = vadd.f32 %v250_v8, %v249_v5 }
 0x14b   :  { %855 = vmatmul.msk.bf16.gmra.mxu0 %vm147_vm0, %v893_v53 }
 0x14c   :  { %v252_v12 = vrot.slane %v251_v10, 2 }
 0x14e   :  { %v253_v15 = vadd.f32 %v252_v12, %v251_v10 }
 0x150   :  { %v254_v17 = vrot.slane %v253_v15, 1 }
 0x152   :  { %v255_v18 = vadd.f32 %v254_v17, %v253_v15 }
 0x154   :  { %v256_v19 = vmul.f32 %v255_v18, %v117_v29 }
 0x156   :  { %v257_v20 = vperm.slane %v256_v19, 0 }
 0x158   :  { %v258_v21 = vpack.c.bf16 %v257_v20, %v257_v20 }
 0x15a   :  { %267 = vmatmul.bf16.vlgmr.msra.gmra.mxu3 %v258_v21 }
 0x15b   :  { %711 = vmatpush.bf16.msra.mxu3 %v1009_v0 }
 0x15f   :  { %712 = vmatpush.bf16.msra.mxu3 %v1021_v3 }
 0x163   :  { %713 = vmatpush.bf16.msra.mxu3 %v1032_v6 }
 0x167   :  { %714 = vmatpush.bf16.msra.mxu3 %v1041_v7 }
 0x16b   :  { %715 = vmatpush.bf16.msra.mxu3 %v1053_v9 }
 0x16f   :  { %716 = vmatpush.bf16.msra.mxu3 %v1065_v11 }
 0x173   :  { %717 = vmatpush.bf16.msra.mxu3 %v1078_v13 }
 0x177   :  { %718 = vmatpush.bf16.msra.mxu3 %v1093_v16 }
 0x1b8   :  { %v388_v4 = vpop.f32.mrf.mxu0 }
 0x1c0   :  { %v390_v5 = vpop.f32.mrf.mxu0 }
 0x1c8   :  { %v393_v20 = vpop.f32.mrf.mxu0 }
 0x1dd   :  { %v268_v23 = vpop.f32.mrf.mxu3 }
 0x1de   :  { %v277_v24 = vadd.f32 %v275_v22, %v268_v23  ;;  %v395_v22 = vpop.f32.mrf.mxu0 }
 0x1e0   :  { %v832_v25 = vmul.f32 -1.442695, %v277_v24 }
 0x1e2   :  { %903 = vpow2.f32 %v832_v25 }
 0x1e5   :  { %v270_v0 = vpop.f32.mrf.mxu3 }
 0x1e6   :  { %v864_v0 = vld [vmem:[%s1300_s4 + $0xa8] sm:$0xff] }
 0x1e8   :  { %v904_v27 = vpop.eup %903 }
 0x1e9   :  { %v281_v3 = vadd.f32 1.0, %v904_v27  ;;  %v867_v27 = vld [vmem:[%s1300_s4 + $0xc0] sm:$0xff] }
 0x1eb   :  { %905 = vrcp.f32 %v281_v3  ;;  %v293_v30 = vand.u32 2147483648, %v281_v3  ;;  %v291_v11 = vand.u32 2147483647, %v281_v3  ;;  %vm287_vm6 = vweird.f32 %v281_v3 }
 0x1ed   :  { %v294_v13 = vor.u32 1.1754944e-38, %v293_v30  ;;  %vm292_vm9 = vcmp.eq.f32.partialorder %v291_v11, 8.507059e+37 }
 0x1f1   :  { %v906_v6 = vpop.eup %905 }
 0x1f2   :  { %v283_v29 = vmul.f32 %v906_v6, %v281_v3  ;;  %vm288_vm5 = vweird.f32 %v906_v6 }
 0x1f3   :  { %vm289_vm7 = vmor %vm287_vm6, %vm288_vm5 }
 0x1f4   :  { %v284_v7 = vsub.f32 1.0, %v283_v29 }
 0x1f6   :  { %v285_v9 = vmul.f32 %v906_v6, %v284_v7 }
 0x1f8   :  { %v286_v31 = vadd.f32 %v906_v6, %v285_v9 }
 0x1fa   :  { %v290_v16 = vsel %vm289_vm7, %v906_v6, %v286_v31 }
 0x1fb   :  { %v295_v32 = vsel %vm292_vm9, %v294_v13, %v290_v16 }
 0x1fc   :  { %v307_v33 = vsel %vm306_vm10, %v295_v32, -1.0  ;;  %v302_v34 = vsel %vm301_vm8, %v295_v32, -1.0 }
 0x1fd   :  { %v308_v35 = vsel %vm297_vm3, %v307_v33, -inf  ;;  %v303_v36 = vsel %vm297_vm3, %v302_v34, -inf }
 0x1fe   :  { %309 = vmax.xlane.f32.xlu0 %v308_v35  ;;  %304 = vmax.xlane.f32.xlu1 %v303_v36 }
 0x212   :  { %407 = vperm.xlu0 %900, %v837_v37  }
 0x217   :  { %412 = vperm.xlu1 %901, %v838_v38  }
 0x21a   :  { %422 = vperm.xlu0 %900, %v840_v39  }
 0x21f   :  { %450 = vperm.xlu1 %901, %v841_v40  }
 0x222   :  { %455 = vperm.xlu0 %900, %v842_v41  }
 0x227   :  { %465 = vperm.xlu1 %901, %v844_v42  }
 0x22a   :  { %499 = vperm.xlu0 %900, %v845_v43  }
 0x271   :  { %v310_v47 = vpop.xlane.xlu0 %309  ;;  %v305_v54 = vpop.xlane.xlu1 %304 }
 0x272   :  { %vm311_vm11 = vcmp.ge.f32.partialorder %v307_v33, %v310_v47  ;;  %v320_v55 = vmul.f32 0.8, %v305_v54 }
 0x273   :  { %vm312_vm12 = vmand %vm311_vm11, %vm306_vm10 }
 0x274   :  { %v313_v48 = vsel %vm312_vm12, %v1199_v46, 128.0  ;;  %vm321_vm13 = vcmp.gt.f32.partialorder %v320_v55, %v310_v47 }
 0x275   :  { %v314_v49 = vsel %vm297_vm3, %v313_v48, inf  ;;  %vm322_vm15 = vmor %vm319_vm14, %vm321_vm13 }
 0x276   :  { %315 = vmin.xlane.f32.xlu2 %v314_v49  ;;  %v1220_v58 = vsel %vm322_vm15, 1.0, %v968_v57 }
 0x277   :  { %v324_v60 = vsub.f32 1.0, %v1220_v58 }
 0x284   :  { %v408_v6 = vpop.permute.xlu0 %407 }
 0x289   :  { %v413_v29 = vpop.permute.xlu1 %412 }
 0x28c   :  { %v423_v30 = vpop.permute.xlu0 %422 }
 0x28e   :  { %417 = vperm.xlu2 %902, %v839_v51  }
 0x291   :  { %v451_v32 = vpop.permute.xlu1 %450 }
 0x294   :  { %v456_v36 = vpop.permute.xlu0 %455 }
 0x296   :  { %460 = vperm.xlu2 %902, %v843_v52  }
 0x299   :  { %v466_v45 = vpop.permute.xlu1 %465 }
 0x2e9   :  { %v316_v59 = vpop.xlane.xlu2 %315 }
 0x2ea   :  { %vm317_vm1 = vcmp.eq.f32.partialorder %v1199_v46, %v316_v59 }
 0x2eb   :  { %v318_v61 = vsel %vm317_vm1, %v1150_v28, 0.0 }
 0x2ec   :  { %v325_v62 = vmul.f32 %v324_v60, %v318_v61  ;;  %v500_v61 = vpop.permute.xlu0 %499 }
 0x2ee   :  { %v1226_v63 = vadd.f32 %v325_v62, %v1083_v14 }
 0x2f0   :  { %v328_v1 = vperm.slane %v1226_v63, 0  ;;  %vm344_vm4 = vcmp.lt.f32.partialorder %v1226_v63, 0.5  ;;  %vm525_vm11 = vcmp.gt.f32.partialorder %v1226_v63, 0.5 }
 0x2f1   :  { %v418_v9 = vpop.permute.xlu2 %417 }
 0x2f2   :  { %v329_v2 = vpack.c.bf16 %v328_v1, %v328_v1 }
 0x2f4   :  { %338 = vmatmul.bf16.vlgmr.msrb.gmra.mxu1 %v329_v2 }
 0x2f9   :  { %v461_v38 = vpop.permute.xlu2 %460 }
 0x371   :  { %v339_v8 = vpop.f32.mrf.mxu1 }
 0x372   :  { %vm343_vm2 = vcmp.gt.f32.partialorder %v339_v8, 0.0 }
 0x373   :  { %vm345_vm5 = vmand %vm343_vm2, %vm344_vm4 }
 0x374   :  { %v1232_v10 = vsel %vm345_vm5, %v114_v26, 0.0  ;;  %v862_v26 = vld [vmem:[%s1300_s4 + $0x98] sm:$0xff] }
 0x375   :  { %v347_v28 = vadd.f32 %v1232_v10, %v1226_v63  ;;  %v522_v12 = vsel %vm297_vm3, %v1232_v10, 0.0  ;;  %vm530_vm10 = vcmp.gt.f32.partialorder %v1232_v10, 0.5 }
 0x376   :  { %523 = vadd.xlane.f32.xlu0 %v522_v12 }
 0x377   :  { %v398_v15 = vperm.slane %v347_v28, 0 }
 0x379   :  { %v341_v17 = vpop.f32.mrf.mxu1  ;;  %v399_v18 = vmul.f32 %v398_v15, %v388_v4  ;;  %v400_v19 = vmul.f32 %v398_v15, %v390_v5  ;;  %v402_v23 = vmul.f32 %v398_v15, %v395_v22  ;;  %v401_v24 = vmul.f32 %v398_v15, %v393_v20 }
 0x37b   :  { %v403_v21 = vpack.c.bf16 %v400_v19, %v399_v18  ;;  %v404_v25 = vpack.c.bf16 %v402_v23, %v401_v24 }
 0x37d   :  { %433 = vmatmul.bf16.vlgmr.msrb.gmra.mxu2 %v403_v21 }
 0x38a   :  { %639 = vperm.xlu0 %900, %v862_v26  }
 0x38d   :  { %438 = vmatmul.bf16.gmra.mxu2 %v404_v25 }
 0x392   :  { %649 = vperm.xlu0 %900, %v864_v0  }
 0x39a   :  { %687 = vperm.xlu0 %900, %v867_v27   ;;  %v861_v27 = vld [vmem:[%s1300_s4 + $0x90] sm:$0xff] }
 0x400   :  { %v434_v3 = vpop.f32.mrf.mxu2 }
 0x401   :  { %v435_v13 = vadd.f32 %v434_v3, %v408_v6  ;;  %v865_v3 = vld [vmem:[%s1300_s4 + $0xb0] sm:$0xff]  ;;  %v868_v6 = vld [vmem:[%s1300_s4 + $0xc8] sm:$0xff] }
 0x403   :  { %v444_v34 = vmax.f32 %v435_v13, 0.0  ;;  %v869_v13 = vld [vmem:[%s1300_s4 + $0xd0] sm:$0xff] }
 0x405   :  { %v468_v40 = vmul.f32 %v451_v32, %v444_v34  ;;  %v524_v34 = vpop.xlane.xlu0 %523 }
 0x406   :  { %vm543_vm14 = vcmp.lt.f32.partialorder %v524_v34, 0.5 }
 0x408   :  { %v436_v7 = vpop.f32.mrf.mxu2 }
 0x409   :  { %v437_v11 = vadd.f32 %v436_v7, %v413_v29 }
 0x40b   :  { %v445_v33 = vmax.f32 %v437_v11, 0.0  ;;  %v863_v11 = vld [vmem:[%s1300_s4 + $0xa0] sm:$0xff] }
 0x40d   :  { %v469_v37 = vmul.f32 %v456_v36, %v445_v33  ;;  %v327_v36 = vmax.f32 %v1220_v58, 0.0 }
 0x40f   :  { %v472_v43 = vadd.f32 %v469_v37, %v468_v40 }
 0x410   :  { %v439_v31 = vpop.f32.mrf.mxu2 }
 0x411   :  { %v440_v16 = vadd.f32 %v439_v31, %v418_v9  ;;  %v894_v9 = vld [vmem:[%s1299_s3 + $0x20] sm:$0xff]  ;;  %v866_v31 = vld [vmem:[%s1300_s4 + $0xb8] sm:$0xff] }
 0x412   :  { %878 = vmatmul.msk.bf16.vlgmr.msra.gmra.mxu0 %vm147_vm0, %v894_v9 }
 0x413   :  { %v446_v35 = vmax.f32 %v440_v16, 0.0  ;;  %v895_v16 = vld [vmem:[%s1299_s3 + $0x28] sm:$0xff]  ;;  %s969_s3 = smov [#allocation4]  }
 0x414   :  { %s770_s4 = sshll.u32 %s969_s3, 4  ;;  %s771_s4 = int_to_ptr.vmem [resolvable:$true] %s770_s4 }
 0x415   :  { %v470_v41 = vmul.f32 %v461_v38, %v446_v35  ;;  %v548_v38 = vsub.f32 1.0, %v327_v36 }
 0x417   :  { %v473_v47 = vadd.f32 %v472_v43, %v470_v41 }
 0x418   :  { %v441_v39 = vpop.f32.mrf.mxu2 }
 0x419   :  { %v442_v42 = vadd.f32 %v441_v39, %v423_v30 }
 0x41b   :  { %v447_v44 = vmax.f32 %v442_v42, 0.0 }
 0x41d   :  { %v471_v48 = vmul.f32 %v466_v45, %v447_v44 }
 0x41f   :  { %v474_v49 = vadd.f32 %v473_v47, %v471_v48 }
 0x421   :  { %v475_v50 = vrot.slane %v474_v49, 4 }
 0x422   :  { %879 = vmatmul.msk.bf16.gmra.mxu0 %vm147_vm0, %v895_v16 }
 0x423   :  { %v476_v51 = vadd.f32 %v475_v50, %v474_v49 }
 0x425   :  { %v477_v52 = vrot.slane %v476_v51, 2 }
 0x427   :  { %v478_v53 = vadd.f32 %v477_v52, %v476_v51 }
 0x429   :  { %v479_v54 = vrot.slane %v478_v53, 1 }
 0x42b   :  { %v480_v55 = vadd.f32 %v479_v54, %v478_v53 }
 0x42d   :  { %v481_v56 = vmul.f32 %v480_v55, %v347_v28 }
 0x42f   :  { %v482_v59 = vperm.slane %v481_v56, 0 }
 0x431   :  { %v483_v60 = vpack.c.bf16 %v482_v59, %v482_v59 }
 0x433   :  { %492 = vmatmul.bf16.vlgmr.msrb.gmra.mxu3 %v483_v60 }
 0x48f   :  { %v615_v47 = vpop.f32.mrf.mxu0 }
 0x497   :  { %v617_v48 = vpop.f32.mrf.mxu0 }
 0x49f   :  { %v620_v53 = vpop.f32.mrf.mxu0 }
 0x4a7   :  { %v622_v54 = vpop.f32.mrf.mxu0 }
 0x4b6   :  { %v493_v62 = vpop.f32.mrf.mxu3 }
 0x4b7   :  { %v502_v1 = vadd.f32 %v500_v61, %v493_v62  ;;  %v640_v61 = vpop.permute.xlu0 %639 }
 0x4b9   :  { %v856_v2 = vmul.f32 -1.442695, %v502_v1 }
 0x4bb   :  { %907 = vpow2.f32 %v856_v2 }
 0x4be   :  { %v495_v4 = vpop.f32.mrf.mxu3 }
 0x4bf   :  { %v650_v4 = vpop.permute.xlu0 %649 }
 0x4c1   :  { %v908_v5 = vpop.eup %907 }
 0x4c2   :  { %v506_v8 = vadd.f32 1.0, %v908_v5 }
 0x4c4   :  { %909 = vrcp.f32 %v506_v8  ;;  %v518_v18 = vand.u32 2147483648, %v506_v8  ;;  %v516_v20 = vand.u32 2147483647, %v506_v8  ;;  %vm512_vm7 = vweird.f32 %v506_v8 }
 0x4c6   :  { %v519_v21 = vor.u32 1.1754944e-38, %v518_v18  ;;  %vm517_vm9 = vcmp.eq.f32.partialorder %v516_v20, 8.507059e+37 }
 0x4ca   :  { %v910_v12 = vpop.eup %909 }
 0x4cb   :  { %v508_v15 = vmul.f32 %v910_v12, %v506_v8  ;;  %vm513_vm6 = vweird.f32 %v910_v12 }
 0x4cc   :  { %vm514_vm8 = vmor %vm512_vm7, %vm513_vm6 }
 0x4cd   :  { %v509_v17 = vsub.f32 1.0, %v508_v15 }
 0x4cf   :  { %v510_v19 = vmul.f32 %v910_v12, %v509_v17 }
 0x4d1   :  { %v511_v28 = vadd.f32 %v910_v12, %v510_v19 }
 0x4d3   :  { %v515_v22 = vsel %vm514_vm8, %v910_v12, %v511_v28 }
 0x4d4   :  { %v520_v23 = vsel %vm517_vm9, %v519_v21, %v515_v22  ;;  %v688_v22 = vpop.permute.xlu0 %687 }
 0x4d5   :  { %v531_v26 = vsel %vm530_vm10, %v520_v23, -1.0  ;;  %v526_v24 = vsel %vm525_vm11, %v520_v23, -1.0 }
 0x4d6   :  { %v532_v25 = vsel %vm297_vm3, %v531_v26, -inf  ;;  %v527_v0 = vsel %vm297_vm3, %v526_v24, -inf }
 0x4d7   :  { %533 = vmax.xlane.f32.xlu2 %v532_v25  ;;  %528 = vmax.xlane.f32.xlu1 %v527_v0 }
 0x4f0   :  { %634 = vperm.xlu1 %901, %v861_v27  }
 0x4f8   :  { %677 = vperm.xlu1 %901, %v865_v3  }
 0x500   :  { %692 = vperm.xlu1 %901, %v868_v6  }
 0x54a   :  { %v534_v29 = vpop.xlane.xlu2 %533  ;;  %v529_v32 = vpop.xlane.xlu1 %528 }
 0x54b   :  { %vm535_vm12 = vcmp.ge.f32.partialorder %v531_v26, %v534_v29  ;;  %v544_v33 = vmul.f32 0.8, %v529_v32 }
 0x54c   :  { %vm536_vm13 = vmand %vm535_vm12, %vm530_vm10 }
 0x54d   :  { %v537_v7 = vsel %vm536_vm13, %v1199_v46, 128.0 }
 0x54e   :  { %v538_v30 = vsel %vm297_vm3, %v537_v7, inf  ;;  %vm545_vm3 = vcmp.gt.f32.partialorder %v544_v33, %v534_v29 }
 0x54f   :  { %539 = vmin.xlane.f32.xlu2 %v538_v30  ;;  %vm546_vm15 = vmor %vm543_vm14, %vm545_vm3 }
 0x550   :  { %v547_v35 = vsel %vm546_vm15, 1.0, %v968_v57  ;;  %v571_v57 = vrot.slane %v1083_v14, 2 }
 0x551   :  { %v549_v37 = vsub.f32 1.0, %v547_v35 }
 0x553   :  { %v550_v40 = vmul.f32 %v549_v37, %v548_v38 }
 0x562   :  { %v635_v62 = vpop.permute.xlu1 %634 }
 0x567   :  { %644 = vperm.xlu2 %902, %v863_v11  }
 0x56a   :  { %v678_v17 = vpop.permute.xlu1 %677 }
 0x56f   :  { %682 = vperm.xlu2 %902, %v866_v31  }
 0x572   :  { %v693_v3 = vpop.permute.xlu1 %692 }
 0x577   :  { %726 = vperm.xlu2 %902, %v869_v13  }
 0x5c2   :  { %v540_v39 = vpop.xlane.xlu2 %539 }
 0x5c3   :  { %vm541_vm1 = vcmp.eq.f32.partialorder %v1199_v46, %v540_v39 }
 0x5c4   :  { %v542_v41 = vsel %vm541_vm1, %v1232_v10, 0.0 }
 0x5c5   :  { %v551_v42 = vmul.f32 %v550_v40, %v542_v41 }
 0x5c7   :  { %v552_v43 = vadd.f32 %v551_v42, %v1226_v63 }
 0x5c9   :  { %v553_v44 = vperm.slane %v552_v43, 0  ;;  %vm569_vm2 = vcmp.lt.f32.partialorder %v552_v43, 0.5 }
 0x5ca   :  { %v645_v2 = vpop.permute.xlu2 %644 }
 0x5cb   :  { %v554_v45 = vpack.c.bf16 %v553_v44, %v553_v44 }
 0x5cd   :  { %563 = vmatmul.bf16.vlgmr.msra.gmra.mxu1 %v554_v45 }
 0x5d2   :  { %v683_v28 = vpop.permute.xlu2 %682 }
 0x5da   :  { %v727_v35 = vpop.permute.xlu2 %726 }
 0x64a   :  { %v564_v49 = vpop.f32.mrf.mxu1 }
 0x64b   :  { %vm568_vm0 = vcmp.gt.f32.partialorder %v564_v49, 0.0  ;;  %v749_v49 = vrot.slane %v1083_v14, 3 }
 0x64c   :  { %vm570_vm4 = vmand %vm568_vm0, %vm569_vm2 }
 0x64d   :  { %v573_v58 = vsel %vm570_vm4, %v571_v57, 0.0 }
 0x64e   :  { %v574_v50 = vadd.f32 %v573_v58, %v552_v43  ;;  %753 = vst [vmem:[#allocation4] sm:$0x1] %v573_v58 }
 0x64f   :  { %775 = dma.vmem_to_hbm [thread:$0]  %s771_s4, 16, %s773_s28, [#allocation5]  }
 0x650   :  { %v625_v46 = vperm.slane %v574_v50, 0 }
 0x652   :  { %v566_v51 = vpop.f32.mrf.mxu1  ;;  %v626_v10 = vmul.f32 %v625_v46, %v615_v47  ;;  %v627_v52 = vmul.f32 %v625_v46, %v617_v48  ;;  %v629_v55 = vmul.f32 %v625_v46, %v622_v54  ;;  %v628_v56 = vmul.f32 %v625_v46, %v620_v53 }
 0x654   :  { %v630_v63 = vpack.c.bf16 %v627_v52, %v626_v10  ;;  %v631_v59 = vpack.c.bf16 %v629_v55, %v628_v56 }
 0x656   :  { %660 = vmatmul.bf16.vlgmr.msra.gmra.mxu2 %v630_v63 }
 0x666   :  { %665 = vmatmul.bf16.gmra.mxu2 %v631_v59 }
 0x6d9   :  { %v661_v60 = vpop.f32.mrf.mxu2 }
 0x6da   :  { %v662_v12 = vadd.f32 %v661_v60, %v635_v62 }
 0x6dc   :  { %v671_v19 = vmax.f32 %v662_v12, 0.0 }
 0x6de   :  { %v695_v26 = vmul.f32 %v678_v17, %v671_v19 }
 0x6e1   :  { %v663_v1 = vpop.f32.mrf.mxu2 }
 0x6e2   :  { %v664_v5 = vadd.f32 %v663_v1, %v640_v61 }
 0x6e4   :  { %v672_v18 = vmax.f32 %v664_v5, 0.0 }
 0x6e6   :  { %v696_v21 = vmul.f32 %v683_v28, %v672_v18 }
 0x6e8   :  { %v699_v0 = vadd.f32 %v696_v21, %v695_v26 }
 0x6e9   :  { %v666_v8 = vpop.f32.mrf.mxu2 }
 0x6ea   :  { %v667_v15 = vadd.f32 %v666_v8, %v645_v2 }
 0x6ec   :  { %v673_v20 = vmax.f32 %v667_v15, 0.0 }
 0x6ee   :  { %v697_v24 = vmul.f32 %v688_v22, %v673_v20 }
 0x6f0   :  { %v700_v6 = vadd.f32 %v699_v0, %v697_v24 }
 0x6f1   :  { %v668_v23 = vpop.f32.mrf.mxu2 }
 0x6f2   :  { %v669_v25 = vadd.f32 %v668_v23, %v650_v4 }
 0x6f4   :  { %v674_v27 = vmax.f32 %v669_v25, 0.0 }
 0x6f6   :  { %v698_v29 = vmul.f32 %v693_v3, %v674_v27 }
 0x6f8   :  { %v701_v7 = vadd.f32 %v700_v6, %v698_v29 }
 0x6fa   :  { %v702_v30 = vrot.slane %v701_v7, 4 }
 0x6fc   :  { %v703_v9 = vadd.f32 %v702_v30, %v701_v7 }
 0x6fe   :  { %v704_v11 = vrot.slane %v703_v9, 2 }
 0x700   :  { %v705_v31 = vadd.f32 %v704_v11, %v703_v9 }
 0x702   :  { %v706_v13 = vrot.slane %v705_v31, 1 }
 0x704   :  { %v707_v16 = vadd.f32 %v706_v13, %v705_v31 }
 0x706   :  { %v708_v32 = vmul.f32 %v707_v16, %v574_v50 }
 0x708   :  { %v709_v33 = vperm.slane %v708_v32, 0 }
 0x70a   :  { %v710_v34 = vpack.c.bf16 %v709_v33, %v709_v33 }
 0x70c   :  { %719 = vmatmul.bf16.vlgmr.msra.gmra.mxu3 %v710_v34 }
 0x78f   :  { %v720_v36 = vpop.f32.mrf.mxu3 }
 0x790   :  { %v729_v37 = vadd.f32 %v727_v35, %v720_v36 }
 0x792   :  { %v880_v38 = vmul.f32 -1.442695, %v729_v37 }
 0x794   :  { %911 = vpow2.f32 %v880_v38 }
 0x797   :  { %v722_v39 = vpop.f32.mrf.mxu3 }
 0x79a   :  { %v912_v40 = vpop.eup %911 }
 0x79b   :  { %v733_v41 = vadd.f32 1.0, %v912_v40 }
 0x79d   :  { %913 = vrcp.f32 %v733_v41  ;;  %v745_v45 = vand.u32 2147483648, %v733_v41  ;;  %v743_v48 = vand.u32 2147483647, %v733_v41  ;;  %vm739_vm6 = vweird.f32 %v733_v41 }
 0x79f   :  { %v746_v58 = vor.u32 1.1754944e-38, %v745_v45  ;;  %vm744_vm8 = vcmp.eq.f32.partialorder %v743_v48, 8.507059e+37 }
 0x7a3   :  { %v914_v42 = vpop.eup %913 }
 0x7a4   :  { %v735_v43 = vmul.f32 %v914_v42, %v733_v41  ;;  %vm740_vm5 = vweird.f32 %v914_v42 }
 0x7a5   :  { %vm741_vm7 = vmor %vm739_vm6, %vm740_vm5 }
 0x7a6   :  { %v736_v44 = vsub.f32 1.0, %v735_v43 }
 0x7a8   :  { %v737_v47 = vmul.f32 %v914_v42, %v736_v44 }
 0x7aa   :  { %v738_v57 = vadd.f32 %v914_v42, %v737_v47 }
 0x7ac   :  { %v742_v50 = vsel %vm741_vm7, %v914_v42, %v738_v57 }
 0x7ad   :  { %v747_v46 = vsel %vm744_vm8, %v746_v58, %v742_v50 }
 0x7ae   :  { %v751_v51 = vmul.f32 %v749_v49, %v747_v46 }
 0x7b0   :  { %752 = vst [vmem:[#allocation2] sm:$0x1] %v751_v51 }
 0x7b1   :  { %764 = dma.vmem_to_hbm [thread:$0]  %s760_s29, 16, %s762_s7, [#allocation3]  }
 0x7b2   :  { %963 = dma.done.wait [#allocation3], 16  }
 0x7b3   :  { %964 = vsyncadd [#allocation3], 4294967280 }
 0x7b4   :  { %965 = dma.done.wait [#allocation5], 16  }
 0x7b5   :  { %966 = vsyncadd [#allocation5], 4294967280 }
 0x7b6   :  { %784 = vsyncpa [#allocation3], 1 }
 0x7b7   :  { %785 = vsyncpa [#allocation5], 1 }

</bundles_post_ra>
